<compile_context>
chip_gen: v7x
topology: tpu7x:2x2x1
jax: 0.10.0
libtpu: 0.0.40
codegen_flags: <defaults>
</compile_context>

<pallas_src>
import functools

import jax
import jax.numpy as jnp
import numpy as np
from jax.experimental import pallas as pl
from jax.experimental.pallas import tpu as pltpu


# --------------------------------------------------------------------------- #
# Kernel
# --------------------------------------------------------------------------- #
def _temporal_block_kernel(x_ref, w_ref, b_ref, *rest, kernel_size, dilation,
                           padding, tile_l, has_downsample, use_im2col):
    """Grid = (N, Lpad // tile_l); one (batch row, L tile) per step.

    x_ref   : (1, Cin, TL)          activation tile (NCL layout, compute dtype)
    w_ref   : (Cout, K*Cin)         fused weight  (use_im2col)   -- resident
              (K, Cout, Cin)        per-tap weight (not im2col)  -- resident
    b_ref   : (Cout, 1)  f32        conv bias
    [wd_ref : (Cout, Cin)]          1x1 downsample weight (if has_downsample)
    [bd_ref : (Cout, 1)  f32]       1x1 downsample bias   (if has_downsample)
    o_ref   : (1, Cout, TL)
    hist_ref: (Cin, max(padding,1)) causal-history carry (compute dtype)
    """
    if has_downsample:
        wd_ref, bd_ref, o_ref, hist_ref = rest
    else:
        o_ref, hist_ref = rest

    j = pl.program_id(1)
    c_out = o_ref.shape[1]
    x_tile = x_ref[0]                                  # (Cin, TL), native bf16

    if padding > 0:
        # Zero causal history at the start of every batch row.
        @pl.when(j == 0)
        def _():
            hist_ref[...] = jnp.zeros_like(hist_ref)

        x_win = jnp.concatenate([hist_ref[...], x_tile], axis=1)  # (Cin, P+TL)
        # Carry the last `padding` columns to the next tile (also correct when
        # padding > tile_l: the slice then spans old history + this tile).
        hist_ref[...] = x_win[:, tile_l:tile_l + padding]
    else:
        x_win = x_tile

    # ---- dilated causal conv on the MXU (f32 accumulate) -------------------
    if use_im2col:
        taps = [x_win[:, k * dilation:k * dilation + tile_l]
                for k in range(kernel_size)]
        x_stack = taps[0] if kernel_size == 1 else jnp.concatenate(taps, axis=0)
        acc = jnp.dot(w_ref[...], x_stack, preferred_element_type=jnp.float32)
    else:
        acc = jnp.zeros((c_out, tile_l), jnp.float32)
        for k in range(kernel_size):
            acc = acc + jnp.dot(w_ref[k],
                                x_win[:, k * dilation:k * dilation + tile_l],
                                preferred_element_type=jnp.float32)

    acc = acc + b_ref[...]                             # (Cout,1) broadcast, f32
    out = jnp.maximum(acc, 0.0)                        # ReLU (post-chomp)

    # ---- residual branch -----------------------------------------------------
    if has_downsample:
        res = jnp.dot(wd_ref[...], x_tile,
                      preferred_element_type=jnp.float32) + bd_ref[...]
    else:
        res = x_tile.astype(jnp.float32)               # identity (Cin == Cout)

    o_ref[0] = jnp.maximum(out + res, 0.0).astype(o_ref.dtype)   # final ReLU


# --------------------------------------------------------------------------- #
# Tile / VMEM budgeting helpers
# --------------------------------------------------------------------------- #
def _round_up(x, m):
    return ((x + m - 1) // m) * m


def _vmem_capacity_bytes():
    try:
        return int(pltpu.get_tpu_info().vmem_capacity_bytes)
    except Exception:
        return 64 << 20   # conservative: v7x per-TensorCore VMEM


def _vmem_working_set(tile_l, c_in, c_out, kernel_size, padding, eb, ob,
                      use_im2col, has_downsample):
    """Rough per-step VMEM estimate (double-buffered I/O + intermediates)."""
    io = 2 * c_in * tile_l * eb + 2 * c_out * tile_l * ob
    wts = 2 * (c_out * kernel_size * c_in * eb + c_out * 4)
    if has_downsample:
        wts += 2 * (c_out * c_in * eb + c_out * 4)
    hist = c_in * max(padding, 1) * eb
    win = c_in * (tile_l + padding) * eb
    stack = kernel_size * c_in * tile_l * eb if use_im2col else 0
    acc = 2 * c_out * tile_l * 4          # f32 accumulator + relu temp
    resid = c_in * tile_l * 4             # f32 residual upcast
    return int(1.3 * (io + wts + hist + win + stack + acc + resid))


def _choose_tile_l(seq_len, *, c_in, c_out, kernel_size, padding, eb, ob,
                   use_im2col, has_downsample, vmem_budget, max_tile=2048):
    """Largest multiple-of-128 L tile (<= max_tile) fitting the VMEM budget."""
    t = min(max_tile, _round_up(seq_len, 128))
    t = max((t // 128) * 128, 128)
    while t > 128 and _vmem_working_set(
            t, c_in, c_out, kernel_size, padding, eb, ob,
            use_im2col, has_downsample) > vmem_budget:
        t -= 128
    return t


# --------------------------------------------------------------------------- #
# Wrapper
# --------------------------------------------------------------------------- #
def temporal_block_forward(x_ncl, v, g, b, wd, bd, *, kernel_size, dilation,
                           compute_dtype=jnp.bfloat16, out_dtype=None,
                           tile_l=None, use_im2col=None):
    """x_ncl: (N, Cin, L) PyTorch NCL layout.  Returns (N, Cout, L).

    v : (Cout, Cin, K)  weight_norm direction tensor
    g : (Cout,)         weight_norm magnitude
    b : (Cout,)         conv1 bias
    wd: (Cout, Cin) or None   1x1 downsample weight (None iff Cin == Cout)
    bd: (Cout,) or None       1x1 downsample bias
    """
    n, c_in, seq_len = x_ncl.shape
    c_out = v.shape[0]
    padding = (kernel_size - 1) * dilation      # stride fixed to 1 (residual add)
    out_dtype = x_ncl.dtype if out_dtype is None else out_dtype
    eb = jnp.dtype(compute_dtype).itemsize
    ob = jnp.dtype(out_dtype).itemsize

    has_downsample = wd is not None
    if not has_downsample:
        assert c_in == c_out, "identity residual requires n_inputs == n_outputs"
    if use_im2col is None:
        use_im2col = c_in < 128   # fused im2col only when its VMEM copy is cheap

    # --- weight_norm fold (f32 math) then cast to the MXU dtype --------------
    # w = g * v / ||v||, norm per out-channel over (Cin, K)  (PyTorch dim=0).
    v32 = v.astype(jnp.float32)
    v_norm = jnp.sqrt(jnp.sum(v32 ** 2, axis=(1, 2), keepdims=True))
    w_eff = g.reshape(-1, 1, 1).astype(jnp.float32) * v32 / v_norm   # (Cout,Cin,K)
    if use_im2col:
        # Fused layout matching the in-kernel tap concat: w[co, k*Cin + ci].
        w_arg = jnp.transpose(w_eff, (0, 2, 1)).reshape(
            c_out, kernel_size * c_in).astype(compute_dtype)
        w_spec = pl.BlockSpec((c_out, kernel_size * c_in), lambda i, j: (0, 0))
    else:
        # Per-tap layout (K, Cout, Cin) so the kernel slices along a leading dim.
        w_arg = jnp.transpose(w_eff, (2, 0, 1)).astype(compute_dtype)
        w_spec = pl.BlockSpec((kernel_size, c_out, c_in), lambda i, j: (0, 0, 0))
    b_col = b.reshape(c_out, 1).astype(jnp.float32)

    # --- VMEM budget -> L tile (generation-aware, explicit limit) ------------
    vmem_cap = _vmem_capacity_bytes()
    vmem_budget = min(int(0.60 * vmem_cap), 96 << 20)
    vmem_limit = max(32 << 20, min(int(0.85 * vmem_cap), 112 << 20))
    if tile_l is None:
        tile_l = _choose_tile_l(
            seq_len, c_in=c_in, c_out=c_out, kernel_size=kernel_size,
            padding=padding, eb=eb, ob=ob, use_im2col=use_im2col,
            has_downsample=has_downsample, vmem_budget=vmem_budget)
    tile_l = max(128, (int(tile_l) // 128) * 128)   # keep stores lane-dense

    # --- pad L up to a multiple of tile_l (causal conv => right-pad is inert) -
    padded_len = _round_up(seq_len, tile_l)
    x_k = x_ncl.astype(compute_dtype)
    if padded_len != seq_len:
        x_k = jnp.pad(x_k, ((0, 0), (0, 0), (0, padded_len - seq_len)))
    num_l = padded_len // tile_l

    kernel = functools.partial(
        _temporal_block_kernel, kernel_size=kernel_size, dilation=dilation,
        padding=padding, tile_l=tile_l, has_downsample=has_downsample,
        use_im2col=use_im2col)

    in_specs = [
        pl.BlockSpec((1, c_in, tile_l), lambda i, j: (i, 0, j)),   # x tile (bf16)
        w_spec,                                                     # resident weight
        pl.BlockSpec((c_out, 1), lambda i, j: (0, 0)),              # resident bias
    ]
    inputs = [x_k, w_arg, b_col]
    if has_downsample:
        in_specs += [pl.BlockSpec((c_out, c_in), lambda i, j: (0, 0)),
                     pl.BlockSpec((c_out, 1), lambda i, j: (0, 0))]
        inputs += [wd.astype(compute_dtype),
                   bd.reshape(c_out, 1).astype(jnp.float32)]

    out = pl.pallas_call(
        kernel,
        out_shape=jax.ShapeDtypeStruct((n, c_out, padded_len), out_dtype),
        grid_spec=pltpu.PrefetchScalarGridSpec(
            num_scalar_prefetch=0,
            grid=(n, num_l),
            in_specs=in_specs,
            out_specs=pl.BlockSpec((1, c_out, tile_l), lambda i, j: (i, 0, j)),
            scratch_shapes=[pltpu.VMEM((c_in, max(padding, 1)), compute_dtype)],
        ),
        compiler_params=pltpu.CompilerParams(
            dimension_semantics=("parallel", "arbitrary"),
            vmem_limit_bytes=vmem_limit),
    )(*inputs)

    if padded_len != seq_len:
        out = out[:, :, :seq_len]
    return out


# --------------------------------------------------------------------------- #
# Pure-JAX reference (mirrors the PyTorch forward in f32)
# --------------------------------------------------------------------------- #
def _reference_forward(x_ncl, v, g, b, wd, bd, *, kernel_size, dilation):
    padding = (kernel_size - 1) * dilation
    v_norm = jnp.sqrt(jnp.sum(v ** 2, axis=(1, 2), keepdims=True))
    w = g.reshape(-1, 1, 1) * v / v_norm                                  # (Cout,Cin,K)
    out = jax.lax.conv_general_dilated(
        x_ncl, w, window_strides=(1,), padding=[(padding, padding)],
        rhs_dilation=(dilation,),
        dimension_numbers=("NCH", "OIH", "NCH")) + b.reshape(1, -1, 1)
    if padding > 0:
        out = out[:, :, :-padding]                                        # chomp
    out = jnp.maximum(out, 0.0)
    if wd is None:
        res = x_ncl
    else:
        res = jnp.einsum("oc,ncl->nol", wd, x_ncl) + bd.reshape(1, -1, 1)
    return jnp.maximum(out + res, 0.0)


if __name__ == "__main__":
    key = jax.random.PRNGKey(0)
    keys = jax.random.split(key, 12)
    (k_x, k_v, k_b, k_wd, k_bd, k_x2, k_v2, k_b2,
     k_x3, k_v3, k_b3, k_wd3) = keys

    # bf16 MXU inputs vs f32 reference -> relaxed tolerance.
    RTOL, ATOL = 2e-2, 2e-2

    # --- Case 1: Cin != Cout -> 1x1 downsample residual; L=16 padded to 128 --
    N, C_IN, C_OUT, L = 2, 4, 8, 16
    K, DILATION = 3, 2
    x = jax.random.normal(k_x, (N, C_IN, L), jnp.float32)
    v = 0.01 * jax.random.normal(k_v, (C_OUT, C_IN, K), jnp.float32)
    g = jnp.sqrt(jnp.sum(v ** 2, axis=(1, 2)))        # weight_norm init: g = ||v||
    b = 0.01 * jax.random.normal(k_b, (C_OUT,), jnp.float32)
    wd = 0.1 * jax.random.normal(k_wd, (C_OUT, C_IN), jnp.float32)
    bd = 0.1 * jax.random.normal(k_bd, (C_OUT,), jnp.float32)

    out = jax.block_until_ready(temporal_block_forward(
        x, v, g, b, wd, bd, kernel_size=K, dilation=DILATION))
    ref = _reference_forward(x, v, g, b, wd, bd, kernel_size=K, dilation=DILATION)
    np.testing.assert_allclose(np.asarray(out, np.float32), np.asarray(ref),
                               rtol=RTOL, atol=ATOL)
    assert out.shape == (N, C_OUT, L)

    # --- Case 2: Cin == Cout identity residual; multi-tile carry; K-dot path -
    N2, C2, L2, K2, D2 = 2, 8, 256, 3, 4
    x2 = jax.random.normal(k_x2, (N2, C2, L2), jnp.float32)
    v2 = 0.01 * jax.random.normal(k_v2, (C2, C2, K2), jnp.float32)
    g2 = jnp.sqrt(jnp.sum(v2 ** 2, axis=(1, 2)))
    b2 = 0.01 * jax.random.normal(k_b2, (C2,), jnp.float32)

    out2 = jax.block_until_ready(temporal_block_forward(
        x2, v2, g2, b2, None, None, kernel_size=K2, dilation=D2,
        tile_l=128, use_im2col=False))
    ref2 = _reference_forward(x2, v2, g2, b2, None, None,
                              kernel_size=K2, dilation=D2)
    np.testing.assert_allclose(np.asarray(out2, np.float32), np.asarray(ref2),
                               rtol=RTOL, atol=ATOL)
    assert out2.shape == (N2, C2, L2)

    # --- Case 3: non-divisible L (right-pad path) + downsample + im2col ------
    N3, C3_IN, C3_OUT, L3, K3, D3 = 1, 4, 8, 300, 2, 1
    x3 = jax.random.normal(k_x3, (N3, C3_IN, L3), jnp.float32)
    v3 = 0.01 * jax.random.normal(k_v3, (C3_OUT, C3_IN, K3), jnp.float32)
    g3 = jnp.sqrt(jnp.sum(v3 ** 2, axis=(1, 2)))
    b3 = 0.01 * jax.random.normal(k_b3, (C3_OUT,), jnp.float32)
    wd3 = 0.1 * jax.random.normal(k_wd3, (C3_OUT, C3_IN), jnp.float32)
    bd3 = jnp.zeros((C3_OUT,), jnp.float32)

    out3 = jax.block_until_ready(temporal_block_forward(
        x3, v3, g3, b3, wd3, bd3, kernel_size=K3, dilation=D3, tile_l=128))
    ref3 = _reference_forward(x3, v3, g3, b3, wd3, bd3,
                              kernel_size=K3, dilation=D3)
    np.testing.assert_allclose(np.asarray(out3, np.float32), np.asarray(ref3),
                               rtol=RTOL, atol=ATOL)
    assert out3.shape == (N3, C3_OUT, L3)

    print("KERNEL_OK")
</pallas_src>

<mosaic_0001>
module attributes {stable_mosaic.version = 11 : i64} {
  func.func @_temporal_block_kernel(%arg0: i32, %arg1: i32, %arg2: memref<1x4x128xbf16, #tpu.memory_space<vmem>>, %arg3: memref<8x12xbf16, #tpu.memory_space<vmem>>, %arg4: memref<8x1xf32, #tpu.memory_space<vmem>>, %arg5: memref<8x4xbf16, #tpu.memory_space<vmem>>, %arg6: memref<8x1xf32, #tpu.memory_space<vmem>>, %arg7: memref<1x8x128xf32, #tpu.memory_space<vmem>>, %arg8: memref<4x4xbf16, #tpu.memory_space<vmem>>) attributes {dimension_semantics = [#tpu.dimension_semantics<parallel>, #tpu.dimension_semantics<arbitrary>], iteration_bounds = array<i64: 2, 1>, scalar_prefetch = 0 : i64, scratch_operands = 1 : i64, tpu.core_type = #tpu.core_type<tc>, window_params = [{transform_indices = @transform_0, window_bounds = array<i64: 1, 4, 128>}, {pipeline_mode = #tpu.pipeline_mode<synchronous>, transform_indices = @transform_1, window_bounds = array<i64: 8, 12>}, {pipeline_mode = #tpu.pipeline_mode<synchronous>, transform_indices = @transform_2, window_bounds = array<i64: 8, 1>}, {pipeline_mode = #tpu.pipeline_mode<synchronous>, transform_indices = @transform_3, window_bounds = array<i64: 8, 4>}, {pipeline_mode = #tpu.pipeline_mode<synchronous>, transform_indices = @transform_4, window_bounds = array<i64: 8, 1>}, {transform_indices = @transform_5, window_bounds = array<i64: 1, 8, 128>}]} {
    %c0 = arith.constant 0 : index
    %c0_0 = arith.constant 0 : index
    %c0_1 = arith.constant 0 : index
    %0 = vector.load %arg2[%c0, %c0_0, %c0_1] : memref<1x4x128xbf16, #tpu.memory_space<vmem>>, vector<1x4x128xbf16>
    %1 = vector.shape_cast %0 : vector<1x4x128xbf16> to vector<4x128xbf16>
    %c0_i32 = arith.constant 0 : i32
    %2 = arith.cmpi eq, %arg1, %c0_i32 : i32
    %3 = arith.extui %2 : i1 to i32
    %c0_i32_2 = arith.constant 0 : i32
    %4 = arith.cmpi ne, %3, %c0_i32_2 : i32
    scf.if %4 {
      %cst_21 = arith.constant 0.000000e+00 : bf16
      %31 = vector.broadcast %cst_21 : bf16 to vector<4x4xbf16>
      %c0_22 = arith.constant 0 : index
      %c0_23 = arith.constant 0 : index
      %32 = vector.load %arg8[%c0_22, %c0_23] : memref<4x4xbf16, #tpu.memory_space<vmem>>, vector<4x4xbf16>
      tpu.vector_store %arg8[%c0_22, %c0_23], %31 {strides = array<i32>} : memref<4x4xbf16, #tpu.memory_space<vmem>>, vector<4x4xbf16>,
    } else {
    }
    %c0_3 = arith.constant 0 : index
    %c0_4 = arith.constant 0 : index
    %5 = vector.load %arg8[%c0_3, %c0_4] : memref<4x4xbf16, #tpu.memory_space<vmem>>, vector<4x4xbf16>
    %6 = tpu.concatenate %5, %1 in 1 : vector<4x4xbf16>, vector<4x128xbf16> -> vector<4x132xbf16>
    %7 = vector.extract_strided_slice %6 {offsets = [0, 128], sizes = [4, 4], strides = [1, 1]} : vector<4x132xbf16> to vector<4x4xbf16>
    %c0_5 = arith.constant 0 : index
    %c0_6 = arith.constant 0 : index
    %8 = vector.load %arg8[%c0_5, %c0_6] : memref<4x4xbf16, #tpu.memory_space<vmem>>, vector<4x4xbf16>
    tpu.vector_store %arg8[%c0_5, %c0_6], %7 {strides = array<i32>} : memref<4x4xbf16, #tpu.memory_space<vmem>>, vector<4x4xbf16>,
    %9 = vector.extract_strided_slice %6 {offsets = [0, 0], sizes = [4, 128], strides = [1, 1]} : vector<4x132xbf16> to vector<4x128xbf16>
    %10 = vector.extract_strided_slice %6 {offsets = [0, 2], sizes = [4, 128], strides = [1, 1]} : vector<4x132xbf16> to vector<4x128xbf16>
    %11 = vector.extract_strided_slice %6 {offsets = [0, 4], sizes = [4, 128], strides = [1, 1]} : vector<4x132xbf16> to vector<4x128xbf16>
    %12 = tpu.concatenate %9, %10, %11 in 0 : vector<4x128xbf16>, vector<4x128xbf16>, vector<4x128xbf16> -> vector<12x128xbf16>
    %c0_7 = arith.constant 0 : index
    %c0_8 = arith.constant 0 : index
    %13 = vector.load %arg3[%c0_7, %c0_8] : memref<8x12xbf16, #tpu.memory_space<vmem>>, vector<8x12xbf16>
    %cst = arith.constant dense<0.000000e+00> : vector<8x128xf32>
    %14 = tpu.matmul %13, %12, %cst {dimension_numbers = #tpu.dot_dimension_numbers<[1], [0], [0], [1], [0, 0, 1, 1], [], []>} : vector<8x12xbf16>, vector<12x128xbf16>, vector<8x128xf32> -> vector<8x128xf32>
    %c0_9 = arith.constant 0 : index
    %c0_10 = arith.constant 0 : index
    %15 = vector.load %arg4[%c0_9, %c0_10] : memref<8x1xf32, #tpu.memory_space<vmem>>, vector<8x1xf32>
    %16 = vector.broadcast %15 : vector<8x1xf32> to vector<8x128xf32>
    %17 = arith.addf %14, %16 : vector<8x128xf32>
    %cst_11 = arith.constant 0.000000e+00 : f32
    %18 = vector.broadcast %cst_11 : f32 to vector<8x128xf32>
    %19 = arith.maximumf %17, %18 : vector<8x128xf32>
    %c0_12 = arith.constant 0 : index
    %c0_13 = arith.constant 0 : index
    %20 = vector.load %arg5[%c0_12, %c0_13] : memref<8x4xbf16, #tpu.memory_space<vmem>>, vector<8x4xbf16>
    %cst_14 = arith.constant dense<0.000000e+00> : vector<8x128xf32>
    %21 = tpu.matmul %20, %1, %cst_14 {dimension_numbers = #tpu.dot_dimension_numbers<[1], [0], [0], [1], [0, 0, 1, 1], [], []>} : vector<8x4xbf16>, vector<4x128xbf16>, vector<8x128xf32> -> vector<8x128xf32>
    %c0_15 = arith.constant 0 : index
    %c0_16 = arith.constant 0 : index
    %22 = vector.load %arg6[%c0_15, %c0_16] : memref<8x1xf32, #tpu.memory_space<vmem>>, vector<8x1xf32>
    %23 = vector.broadcast %22 : vector<8x1xf32> to vector<8x128xf32>
    %24 = arith.addf %21, %23 : vector<8x128xf32>
    %25 = arith.addf %19, %24 : vector<8x128xf32>
    %cst_17 = arith.constant 0.000000e+00 : f32
    %26 = vector.broadcast %cst_17 : f32 to vector<8x128xf32>
    %27 = arith.maximumf %25, %26 : vector<8x128xf32>
    %c0_18 = arith.constant 0 : index
    %c0_19 = arith.constant 0 : index
    %c0_20 = arith.constant 0 : index
    %28 = vector.load %arg7[%c0_18, %c0_19, %c0_20] : memref<1x8x128xf32, #tpu.memory_space<vmem>>, vector<1x8x128xf32>
    %29 = vector.shape_cast %28 : vector<1x8x128xf32> to vector<8x128xf32>
    %30 = vector.shape_cast %27 : vector<8x128xf32> to vector<1x8x128xf32>
    tpu.vector_store %arg7[%c0_18, %c0_19, %c0_20], %30 {strides = array<i32>} : memref<1x8x128xf32, #tpu.memory_space<vmem>>, vector<1x8x128xf32>,
    return
  }
  func.func @transform_0(%arg0: i32, %arg1: i32) -> (i32, i32, i32) {
    %c0_i32 = arith.constant 0 : i32
    %c0_i32_0 = arith.constant 0 : i32
    return %arg0, %c0_i32, %arg1 : i32, i32, i32
  }
  func.func @transform_1(%arg0: i32, %arg1: i32) -> (i32, i32) {
    %c0_i32 = arith.constant 0 : i32
    %c0_i32_0 = arith.constant 0 : i32
    %c0_i32_1 = arith.constant 0 : i32
    return %c0_i32, %c0_i32_0 : i32, i32
  }
  func.func @transform_2(%arg0: i32, %arg1: i32) -> (i32, i32) {
    %c0_i32 = arith.constant 0 : i32
    %c0_i32_0 = arith.constant 0 : i32
    %c0_i32_1 = arith.constant 0 : i32
    return %c0_i32, %c0_i32_0 : i32, i32
  }
  func.func @transform_3(%arg0: i32, %arg1: i32) -> (i32, i32) {
    %c0_i32 = arith.constant 0 : i32
    %c0_i32_0 = arith.constant 0 : i32
    %c0_i32_1 = arith.constant 0 : i32
    return %c0_i32, %c0_i32_0 : i32, i32
  }
  func.func @transform_4(%arg0: i32, %arg1: i32) -> (i32, i32) {
    %c0_i32 = arith.constant 0 : i32
    %c0_i32_0 = arith.constant 0 : i32
    %c0_i32_1 = arith.constant 0 : i32
    return %c0_i32, %c0_i32_0 : i32, i32
  }
  func.func @transform_5(%arg0: i32, %arg1: i32) -> (i32, i32, i32) {
    %c0_i32 = arith.constant 0 : i32
    %c0_i32_0 = arith.constant 0 : i32
    return %arg0, %c0_i32, %arg1 : i32, i32, i32
  }
}

</mosaic_0001>

<bundles_post_ra>
// kernel: tpu_custom_call.1
= control target key start
LH: loop header
LB: loop body
LE: loop exit
PB: predicated region body
PF: predicated region fallthrough
CT: control target
= control target key end

     0   :  { %10 = vsyncpa [#allocation4], 0  ;;  %s830_s0 = inlined_call_operand.vmem [shape: bf16[2,4,128], index: 0, kind: input, shape index: {}]   ;;  %s831_s1 = inlined_call_operand.vmem [shape: bf16[8,12], index: 1, kind: input, shape index: {}]   ;;  %s832_s2 = inlined_call_operand.vmem [shape: f32[8,1], index: 2, kind: input, shape index: {}]   ;;  %s833_s3 = inlined_call_operand.vmem [shape: bf16[8,4], index: 3, kind: input, shape index: {}]   ;;  %s834_s4 = inlined_call_operand.vmem [shape: f32[8,1], index: 4, kind: input, shape index: {}]   ;;  %s835_s5 = inlined_call_operand.hbm [shape: f32[2,8,128], index: 5, kind: output, shape index: {}]  }
   0x1   :  { %12 = vsyncpa [#allocation4 + $0x1], 0  ;;  %s702_s18 = smov 0   ;;  %s704_s19 = smov 0  }
   0x2   :  { %s706_s20 = smov 0   ;;  %s708_s21 = smov 0  }
   0x3   :  { %s710_s22 = smov 0   ;;  %s712_s23 = smov 0  }
   0x4 LB: > { %s491_s24 = sadd.s32 4294967295, %s662_s23   ;;  %s492_s25 = sadd.s32 4294967294, %s662_s23   ;;  %s662_s23 = sphi %s712_s23, %s18_s23   ;;  %s658_s22 = sphi %s710_s22, %s842_s22   ;;  %s654_s21 = sphi %s708_s21, %s841_s21   ;;  %s650_s20 = sphi %s706_s20, %s840_s20   ;;  %s646_s19 = sphi %s704_s19, %s839_s19   ;;  %s642_s18 = sphi %s702_s18, %s838_s18  }
   0x5   : > { %s30_s26 = sadd.s32 1, %s658_s22  ;;  %s151_s27 = sadd.s32 1, %s650_s20 }
   0x6   : > { %p32_p0 = scmp.ge.s32.totalorder %s30_s26, 2  ;;  %p161_p1 = scmp.ne.s32.totalorder %s650_s20, %s646_s19 }
   0x7   : > { %p162_p2 = scmp.eq.s32.totalorder %s491_s24, 1  ;;  %p167_p3 = scmp.ne.s32.totalorder %s646_s19, %s642_s18 }
   0x8   : > { %s844_s26 = smov (%p32_p0, %s30_s26), 0  ;;  %p168_p5 = scmp.eq.s32.totalorder %s492_s25, 1 }
   0x9   : > { %p742_p4 = por %p162_p2, %p161_p1  ;;  %s146_s29 = ssub.s32 %s658_s22, %s844_s26 }
   0xa   : > { %p495_p6 = scmp.ge.s32.totalorder %s662_s23, 1  ;;  %p149_p7 = scmp.eq.s32.totalorder %s146_s29, 0 }
   0xb   : > { %p749_p8 = por %p168_p5, %p167_p3  ;;  %p208_p9 = scmp.lt.s32.totalorder %s662_s23, 3 }
   0xc   : > { %s755_s6 = scalar_select %p149_p7, %s650_s20, %s151_s27  }
   0xd   : > { %p209_p10 = pnand %p495_p6, %p208_p9 }
   0xe   : > { %p238_p11 = scmp.lt.s32.totalorder (!%p209_p10), %s654_s21, 1  ;;  %v258_v0 = vlaneseq (!%p209_p10)  ;;  %vm251_vm0 = vcmask (!%p209_p10), 25600   ;;  %v664_v1 = vmov (!%p209_p10), 1983009808   ;;  %v665_v3 = vmov (!%p209_p10), 0   ;;  %s666_s12 = smov (!%p209_p10), 4  }
   0xf   : > { %212 = sbr.rel (%p209_p10) target bundleno = 506 (0x1fa), region = 40  ;;  %v256_v2 = vunpack.c.l.s4 (!%p209_p10), %v664_v1  ;;  %252 = vst.msk [vmem:[#allocation2] sm:$0x3] (!%p209_p10), %vm251_vm0, %v665_v3  ;;  %582 = vset.pattern.permute.xlu1 (!%p209_p10), %v665_v3  ;;  %583 = vset.pattern.permute.xlu0 (!%p209_p10), %v665_v3  ;;  %vm288_vm1 = vcmask (!%p209_p10), 1041408   ;;  %v667_v10 = vmov (!%p209_p10), 0.0   ;;  %vm265_vm2 = vcmask (!%p209_p10), 31744  }
  0x10   : > { %v259_v4 = vshrl.u32 (!%p209_p10), %v258_v0, 7  ;;  %514 = vmatprep.subr.bf16.mxu1 (!%p209_p10), %v667_v10  ;;  %508 = vmatprep.subr.bf16.mxu0 (!%p209_p10), %v667_v10  ;;  %v349_v12 = vld [vmem:[%s833_s3] sm:$0xf] (!%p209_p10)  ;;  %vm668_vm3 = vmmov (!%p209_p10), 0   ;;  %s669_s15 = smov (!%p209_p10), 126   ;;  %s670_s16 = smov (!%p209_p10), 124  }
  0x11   : > { %v257_v5 = vunpack.c.0.s8 (!%p209_p10), %v256_v2  ;;  %516 = vmatprep.mubr.msk.bf16.mxu1 (!%p209_p10), %vm668_vm3, %v667_v10  ;;  %510 = vmatprep.mubr.msk.bf16.mxu0 (!%p209_p10), %vm668_vm3, %v667_v10  ;;  %v295_v19 = vld [vmem:[%s832_s2] sm:$0xff] (!%p209_p10)  ;;  %vm278_vm4 = vcmask (!%p209_p10), 1031168   ;;  %vm286_vm5 = vcmask (!%p209_p10), 1014784   ;;  %vm291_vm6 = vcmask (!%p209_p10), 1043456   ;;  %s501_s10 = sshll.u32 (!%p209_p10), %s654_s21, 7 }
  0x12   : > { %v350_v20 = vld [vmem:[%s834_s4] sm:$0xff] (!%p209_p10)  ;;  %vm305_vm7 = vcmask (!%p209_p10), 1045504   ;;  %vm301_vm8 = vcmask (!%p209_p10), 97280  }
  0x13   : > { %v260_v6 = vsub.s32 (!%p209_p10), %v257_v5, %v259_v4  ;;  %v294_v30 = vld [vmem:[%s831_s1] sm:$0xf] (!%p209_p10) }
  0x16   : > { %s239_s7 = scalar_select %p238_p11, %s654_s21, 1  ;;  %v253_v11 = vld [vmem:[#allocation2] sm:$0x3] }
  0x17   : > { %s671_s21 = smov [#allocation3]  }
  0x18   : > { %s497_s8 = sshll.u32 %s239_s7, 1  ;;  %s588_s24 = sshll.u32 %s671_s21, 4  ;;  %s589_s24 = int_to_ptr.vmem [resolvable:$false] %s588_s24 }
  0x19   : > { %s244_s11 = scalar_lea.vmem %s830_s0, %s497_s8  ;;  %s235_s8 = sand.u32 1, %s646_s19  }
  0x1a   : > { %v246_v7 = vld [vmem:[%s244_s11] sm:$0x3]  ;;  %s496_s9 = sshll.u32 %s235_s8, 3  ;;  %s590_s25 = scalar_lea.vmem %s589_s24, 256 }
  0x1b   : > { %v261_v8 = vrot.slane %v246_v7, %v260_v6  ;;  %v360_v9 = vsel %vm288_vm1, %v246_v7, 0  ;;  %s237_s11 = scalar_lea.vmem [#allocation3], %s496_s9 }
  0x1c   : > { %515 = vmatpush3.bf16.msra.mxu1 %v360_v9 }
  0x1d   : > { %262 = vrot.lane.b32.xlu0 %v261_v8, %s666_s12  ;;  %s420_s12 = sshll.u32 %s237_s11, 4  ;;  %s785_s12 = int_to_ptr.vmem [resolvable:$true] %s420_s12 }
  0x1e   : > { %s584_s17 = scalar_lea.vmem %s785_s12, 128  ;;  %p591_p1 = scmp.lt.s32.totalorder %s785_s12, %s589_s24 }
  0x1f   : > { %517 = vmatmul.mubr.msk.bf16.vlgmr.msra.gmra.mrb[0].mxu1 %vm265_vm2, %v349_v12  ;;  %p585_p12 = scmp.ne.s32.totalorder %s785_s12, %s584_s17  ;;  %p592_p2 = scmp.lt.s32.totalorder %s590_s25, %s584_s17 }
  0x21   : > { %p586_p13 = pnand %p585_p12, %p742_p4  ;;  %p593_p3 = por %p592_p2, %p591_p1 }
  0x23   : > { %p587_p0 = pneg %p586_p13 }
  0x25   : > { %p594_p5 = pnand %p593_p3, %p587_p0 }
  0x8f   : > { %v263_v13 = vpop.permute.xlu0 %262 }
  0x90   : > { %v268_v14 = vsel %vm265_vm2, %v253_v11, %v263_v13  ;;  %270 = vst.msk [vmem:[#allocation2] sm:$0x3] %vm251_vm0, %v263_v13  ;;  %v273_v15 = vrot.slane %v263_v13, 6  ;;  %v281_v18 = vrot.slane %v263_v13, 4 }
  0x91   : > { %v272_v16 = vrot.slane %v268_v14, 6  ;;  %v280_v17 = vrot.slane %v268_v14, 4 }
  0x92   : > { %276 = vrot.lane.b32.xlu1 %v273_v15, %s669_s15 }
  0x93   : > { %274 = vrot.lane.b32.xlu0 %v272_v16, %s669_s15  ;;  %s783_s15 = scalar_lea.hbm %s835_s5, %s501_s10 }
  0x96   : > { %282 = vrot.lane.b32.xlu1 %v280_v17, %s670_s16 }
  0x97   : > { %284 = vrot.lane.b32.xlu0 %v281_v18, %s670_s16  ;;  %s406_s16 = scalar_lea.sflag [#allocation4], %s235_s8 }
  0x9a   : > { %298 = vperm.xlu1 %582, %v295_v19  }
  0x9b   : > { %353 = vperm.xlu0 %583, %v350_v20  }
  0xf2   : > { %v396_v31 = vpop.f32.mrb[0].mxu1 }
  0xf3   : > { %v518_v32 = vpop.f32.mrb[1].mxu1 }
  0xf4   : > { %v399_v33 = vpop.f32.mrb[2].mxu1 }
  0xf5   : > { %v519_v34 = vpop.f32.mrb[3].mxu1 }
 0x104   : > { %v277_v21 = vpop.permute.xlu1 %276 }
 0x105   : > { %v275_v22 = vpop.permute.xlu0 %274 }
 0x106   : > { %v279_v23 = vsel %vm278_vm4, %v275_v22, %v277_v21 }
 0x107   : > { %v290_v27 = vsel %vm288_vm1, %v268_v14, %v279_v23 }
 0x108   : > { %v283_v24 = vpop.permute.xlu1 %282 }
 0x109   : > { %v285_v25 = vpop.permute.xlu0 %284 }
 0x10a   : > { %v287_v26 = vsel %vm286_vm5, %v283_v24, %v285_v25 }
 0x10b   : > { %v293_v28 = vsel %vm291_vm6, %v290_v27, %v287_v26 }
 0x10c   : > { %v306_v29 = vsel %vm305_vm7, %v293_v28, 0 }
 0x10d   : > { %509 = vmatpush3.bf16.msra.mxu0 %v306_v29 }
 0x110   : > { %511 = vmatmul.mubr.msk.bf16.vlgmr.msra.gmra.mrb[0].mxu0 %vm301_vm8, %v294_v30 }
 0x119   : > { %v299_v35 = vpop.permute.xlu1 %298 }
 0x11a   : > { %v354_v36 = vpop.permute.xlu0 %353 }
 0x11b   : > { %v397_v40 = vadd.f32 %v396_v31, %v354_v36 }
 0x1e3   : > { %v342_v37 = vpop.f32.mrb[0].mxu0 }
 0x1e4   : > { %v343_v38 = vadd.f32 %v342_v37, %v299_v35  ;;  %v512_v39 = vpop.f32.mrb[1].mxu0 }
 0x1e5   : > { %v345_v41 = vpop.f32.mrb[2].mxu0 }
 0x1e6   : > { %v348_v42 = vmax.f32 %v343_v38, 0.0  ;;  %v513_v43 = vpop.f32.mrb[3].mxu0 }
 0x1e8   : > { %v402_v44 = vadd.f32 %v397_v40, %v348_v42 }
 0x1ea   : > { %v403_v45 = vmax.f32 %v402_v44, 0.0 }
 0x1ec   : > { %404 = vst [vmem:[%s237_s11] sm:$0xff] %v403_v45 }
 0x1ed   : > { %597 = shalt.err (!%p594_p5)
}
 0x1ee   : > { %s598_s27 = scalar_lea.hbm %s783_s15, 128  ;;  %s602_s8 = scalar_lea.hbm %s835_s5, 256 }
 0x1ef   : > { %p599_p6 = scmp.ne.s32.totalorder %s783_s15, %s598_s27  ;;  %p603_p10 = scmp.lt.u32.totalorder %s783_s15, %s835_s5 }
 0x1f0   : > { %p604_p11 = scmp.lt.u32.totalorder %s602_s8, %s598_s27  ;;  %p606_p13 = scmp.lt.u32.totalorder %s598_s27, %s783_s15 }
 0x1f1   : > { %p600_p7 = pnand %p599_p6, %p742_p4 }
 0x1f2   : > { %p605_p12 = por %p604_p11, %p603_p10 }
 0x1f3   : > { %p601_p9 = pneg %p600_p7 }
 0x1f4   : > { %p607_p0 = por %p606_p13, %p605_p12 }
 0x1f6   : > { %p608_p1 = pnand %p607_p0, %p601_p9 }
 0x1f8   : > { %611 = shalt.err (!%p608_p1)
}
 0x1f9   : > { %520 = dma.vmem_to_hbm [thread:$0]  (%p742_p4), %s785_s12, 128, %s783_s15, %s406_s16  }
 0x1fa PF: > { %p526_p2 = scmp.ge.s32.totalorder %s662_s23, 2  ;;  %s432_s11 = sand.u32 1, %s642_s18  }
 0x1fb   : > { %s433_s13 = scalar_lea.sflag [#allocation4], %s432_s11 }
 0x1fc   : > { %p523_p3 = pnand %p526_p2, %p749_p8 }
 0x1fe   : > { %637 = dma.done.wait (!%p523_p3), %s433_s13, 128  }
 0x1ff   : > { %639 = vsyncadd (!%p523_p3), %s433_s13, 4294967168  ;;  %s18_s23 = sadd.s32 1, %s662_s23   ;;  %s838_s18 = smov %s646_s19 }
 0x200   : > { %p15_p5 = scmp.ge.s32.totalorder %s18_s23, 4   ;;  %s839_s19 = smov %s650_s20 }
 0x201   : > { %s840_s20 = smov %s755_s6  ;;  %s841_s21 = smov %s658_s22 }
 0x202   : > { %s842_s22 = smov %s844_s26  ;;  %17 = sbr.rel (!%p15_p5) target bundleno = 4 (0x4), region = 79 }
 0x209   :  { %438 = vsyncpa [#allocation4], 1 }
 0x20a   :  { %440 = vsyncpa [#allocation4 + $0x1], 1 }

</bundles_post_ra>
